<compile_context>
chip_gen: v7x
topology: tpu7x:2x2x1
jax: 0.10.0
libtpu: 0.0.40
codegen_flags: <defaults>
</compile_context>

<pallas_src>
import jax
import jax.numpy as jnp
import numpy as np
from jax.experimental import pallas as pl
from jax.experimental.pallas import tpu as pltpu


def _identity_alias_kernel(x_ref, o_ref):
    # o_ref aliases x_ref's HBM buffer (input_output_aliases={0: 0}), so the
    # output already holds the input bit-exactly.  Nothing to do.
    del x_ref, o_ref


def _make_dma_copy_kernel(bounds):
    """Kernel that copies x -> o via direct HBM->HBM DMA in static chunks.

    `bounds` are static Python ints splitting axis 0; all copies are started
    first (multiple outstanding DMA descriptors) and then waited.
    """
    n_chunks = len(bounds) - 1

    def kernel(x_hbm, o_hbm, sems):
        for c in range(n_chunks):
            lo, hi = bounds[c], bounds[c + 1]
            pltpu.make_async_copy(x_hbm.at[lo:hi], o_hbm.at[lo:hi], sems.at[c]).start()
        for c in range(n_chunks):
            lo, hi = bounds[c], bounds[c + 1]
            pltpu.make_async_copy(x_hbm.at[lo:hi], o_hbm.at[lo:hi], sems.at[c]).wait()

    return kernel


def dummy_augment(x, *, materialize=False, max_chunks=4):
    """Forward pass of DummyAugmentor: returns x unchanged.

    materialize=False (default): zero-work kernel whose output aliases the
    input buffer -- no kernel-driven HBM traffic, no grid, no VMEM use.
    materialize=True: produce a distinct output buffer via chunked HBM->HBM
    DMA (no VMEM round-trip, no per-grid-step overhead, no padding).
    """
    if not materialize:
        return pl.pallas_call(
            _identity_alias_kernel,
            out_shape=jax.ShapeDtypeStruct(x.shape, x.dtype),
            in_specs=[pl.BlockSpec(memory_space=pl.ANY)],
            out_specs=pl.BlockSpec(memory_space=pl.ANY),
            input_output_aliases={0: 0},
        )(x)

    # Materialized copy: direct HBM->HBM DMA, chunked along axis 0.
    orig_shape = x.shape
    x_nd = x.reshape((1,)) if x.ndim == 0 else x  # guard for 0-d inputs
    lead = x_nd.shape[0]
    n_chunks = max(1, min(max_chunks, lead))
    # Static, near-even chunk boundaries along axis 0 (no padding, ragged ok).
    bounds = [(lead * c) // n_chunks for c in range(n_chunks + 1)]
    bounds = sorted(set(bounds))  # drop degenerate empty chunks
    n_chunks = len(bounds) - 1

    out = pl.pallas_call(
        _make_dma_copy_kernel(tuple(bounds)),
        out_shape=jax.ShapeDtypeStruct(x_nd.shape, x_nd.dtype),
        in_specs=[pl.BlockSpec(memory_space=pl.ANY)],
        out_specs=pl.BlockSpec(memory_space=pl.ANY),
        scratch_shapes=[pltpu.SemaphoreType.DMA((n_chunks,))],
    )(x_nd)
    return out.reshape(orig_shape)


if __name__ == "__main__":
    key = jax.random.PRNGKey(0)
    N, C, H, W = 2, 4, 16, 16
    x = jax.random.normal(key, (N, C, H, W), dtype=jnp.float32)

    # Default (free) path: output aliases input.
    out = jax.block_until_ready(dummy_augment(x))
    # Materialized-copy path: distinct buffer via HBM->HBM DMA.
    out_copy = jax.block_until_ready(dummy_augment(x, materialize=True))

    assert out.shape == x.shape and out.dtype == x.dtype
    assert out_copy.shape == x.shape and out_copy.dtype == x.dtype
    # DummyAugmentor.forward(x) == x, bit-exactly, on both paths.
    assert np.array_equal(np.asarray(out), np.asarray(x))
    assert np.array_equal(np.asarray(out_copy), np.asarray(x))

    print("KERNEL_OK")
</pallas_src>

<mosaic_0001>
module attributes {stable_mosaic.version = 11 : i64} {
  func.func @_identity_alias_kernel(%arg0: memref<2x4x16x16xf32, #tpu.memory_space<any>>, %arg1: memref<2x4x16x16xf32, #tpu.memory_space<any>>) attributes {dimension_semantics = [], scalar_prefetch = 0 : i64, scratch_operands = 0 : i64, tpu.core_type = #tpu.core_type<tc>} {
    return
  }
}

</mosaic_0001>

<bundles_post_ra>
// kernel: tpu_custom_call.1
= control target key start
LH: loop header
LB: loop body
LE: loop exit
PB: predicated region body
PF: predicated region fallthrough
CT: control target
= control target key end

     0   :  { %s16_s0 = inlined_call_operand.hbm [shape: f32[2,4,16,16], index: 0, kind: input, shape index: {}, may-alias: {0,1}]   ;;  %s17_s1 = inlined_call_operand.hbm [shape: f32[2,4,16,16], index: 1, kind: output, shape index: {}, may-alias: {0,1}]  }

</bundles_post_ra>
